<compile_context>
chip_gen: v7x
topology: tpu7x:2x2x1
jax: 0.10.0
libtpu: 0.0.40
codegen_flags: <defaults>
</compile_context>

<pallas_src>
import jax
import jax.numpy as jnp
from jax.experimental import pallas as pl
from jax.experimental.pallas import tpu as pltpu

_LANE = 128


def _round_up(x, m):
    return ((x + m - 1) // m) * m


# ---------------------------------------------------------------------------
# Pallas kernel: fused 4-layer MLP forward (weights fully resident in VMEM)
# ---------------------------------------------------------------------------
def _discriminator_kernel(x_ref,
                          w1_ref, b1_ref,
                          w2_ref, b2_ref,
                          w3_ref, b3_ref,
                          w4_ref, b4_ref,
                          o_ref):
    # Layer 1: f32 x f32. The disc_obs_index gather is baked into w1 (zero rows),
    # and K = num_inputs_raw is tiny/unaligned, so keep it on the plain f32 path.
    h = jnp.dot(x_ref[...], w1_ref[...],
                preferred_element_type=jnp.float32) + b1_ref[...]
    h = jnp.maximum(h, 0.0)

    cdt = w2_ref.dtype  # matmul-input dtype for the 128x128 layers (f32 or bf16)

    h = jnp.dot(h.astype(cdt), w2_ref[...],
                preferred_element_type=jnp.float32) + b2_ref[...]
    h = jnp.maximum(h, 0.0)

    h = jnp.dot(h.astype(cdt), w3_ref[...],
                preferred_element_type=jnp.float32) + b3_ref[...]
    h = jnp.maximum(h, 0.0)

    h = jnp.dot(h.astype(cdt), w4_ref[...],
                preferred_element_type=jnp.float32) + b4_ref[...]
    # Bias add / relu / tanh stay in f32 (native on every TPU generation).
    o_ref[...] = 2.0 * jnp.tanh(h)


# ---------------------------------------------------------------------------
# One-time parameter preparation: bake gather into W1, pad to lane-dense shapes
# ---------------------------------------------------------------------------
def prepare_discriminator_params(params, num_inputs_raw, disc_obs_index=None,
                                 compute_dtype=jnp.float32):
    """Returns lane-dense, gather-baked parameters ready for the kernel.

    params: dict with w1..w4 stored as [in, out] and b1..b4 (1-D or [1, out]).
    compute_dtype: dtype of the 128x128-layer weights (bf16 for v5e/v6e MXU rate).
    """
    num_inputs = params["w1"].shape[0]
    hidden = params["w1"].shape[1]
    num_outputs = params["w4"].shape[1]
    hid_p = _round_up(hidden, _LANE)
    out_p = _round_up(num_outputs, _LANE)

    # W1: pad hidden dim to 128, then scatter rows to the raw observation layout so
    # the column gather `state[:, disc_obs_index]` becomes part of the matmul.
    w1_cols = jnp.zeros((num_inputs, hid_p), jnp.float32)
    w1_cols = w1_cols.at[:, :hidden].set(params["w1"].astype(jnp.float32))
    w1 = jnp.zeros((num_inputs_raw, hid_p), jnp.float32)
    if disc_obs_index is not None:
        idx = jnp.asarray(disc_obs_index, jnp.int32)
        w1 = w1.at[idx].set(w1_cols)
    else:
        w1 = w1.at[:num_inputs].set(w1_cols)

    def pad_w(w, rows, cols):
        out = jnp.zeros((rows, cols), compute_dtype)
        return out.at[:w.shape[0], :w.shape[1]].set(w.astype(compute_dtype))

    def pad_b(b, cols):
        b = jnp.reshape(b, (1, -1)).astype(jnp.float32)
        return jnp.zeros((1, cols), jnp.float32).at[:, :b.shape[1]].set(b)

    return {
        "w1": w1,                                   # f32 on purpose (tiny, unaligned K)
        "b1": pad_b(params["b1"], hid_p),
        "w2": pad_w(params["w2"], hid_p, hid_p),
        "b2": pad_b(params["b2"], hid_p),
        "w3": pad_w(params["w3"], hid_p, hid_p),
        "b3": pad_b(params["b3"], hid_p),
        "w4": pad_w(params["w4"], hid_p, out_p),
        "b4": pad_b(params["b4"], out_p),
        "num_outputs": num_outputs,                 # python int (static)
    }


# ---------------------------------------------------------------------------
# Wrapper: tiling over batch, padding, pallas_call
# ---------------------------------------------------------------------------
def discriminator_forward(state, prepped, *, batch_tile=None):
    """state: [B, num_inputs_raw] f32; prepped: output of prepare_discriminator_params."""
    B, D = state.shape
    w1 = prepped["w1"]
    assert D == w1.shape[0], "state feature dim must match num_inputs_raw used in prepare"
    hid_p = w1.shape[1]
    out_p = prepped["w4"].shape[1]
    num_outputs = prepped["num_outputs"]

    # Big batch tiles: single grid step for modest B, 1024-row tiles otherwise
    # (whole problem is <1 MiB of VMEM, well under the v7x 32 MiB scoped default).
    if batch_tile is None:
        batch_tile = min(B, 1024)
    if batch_tile >= B:
        batch_tile = B
        b_pad = B
    else:
        batch_tile = max(8, (batch_tile // 8) * 8)   # keep (8,128) tiling rule
        b_pad = _round_up(B, batch_tile)

    x = state.astype(jnp.float32)
    if b_pad != B:
        x = jnp.pad(x, ((0, b_pad - B), (0, 0)))

    grid = (b_pad // batch_tile,)

    def resident(arr):  # weight/bias fully resident across the whole grid
        return pl.BlockSpec(arr.shape, lambda i: (0, 0))

    flops = 2 * b_pad * (D * hid_p + 2 * hid_p * hid_p + hid_p * out_p)
    param_bytes = sum(int(prepped[k].size) * prepped[k].dtype.itemsize
                      for k in ("w1", "b1", "w2", "b2", "w3", "b3", "w4", "b4"))
    bytes_accessed = int(x.size) * 4 + b_pad * out_p * 4 + param_bytes

    out = pl.pallas_call(
        _discriminator_kernel,
        out_shape=jax.ShapeDtypeStruct((b_pad, out_p), jnp.float32),
        grid_spec=pl.GridSpec(
            grid=grid,
            in_specs=[
                pl.BlockSpec((batch_tile, D), lambda i: (i, 0)),
                resident(prepped["w1"]), resident(prepped["b1"]),
                resident(prepped["w2"]), resident(prepped["b2"]),
                resident(prepped["w3"]), resident(prepped["b3"]),
                resident(prepped["w4"]), resident(prepped["b4"]),
            ],
            out_specs=pl.BlockSpec((batch_tile, out_p), lambda i: (i, 0)),
        ),
        compiler_params=pltpu.CompilerParams(
            dimension_semantics=("parallel",)),
        cost_estimate=pl.CostEstimate(
            flops=int(flops),
            transcendentals=int(b_pad * out_p),
            bytes_accessed=int(bytes_accessed)),
    )(x,
      prepped["w1"], prepped["b1"],
      prepped["w2"], prepped["b2"],
      prepped["w3"], prepped["b3"],
      prepped["w4"], prepped["b4"])

    return out[:B, :num_outputs]


# ---------------------------------------------------------------------------
# Deterministic parameter init (matches weights_init_: xavier_uniform, bias=0)
# ---------------------------------------------------------------------------
def _xavier_uniform(key, fan_in, fan_out, gain=1.0):
    bound = gain * (6.0 / (fan_in + fan_out)) ** 0.5
    return jax.random.uniform(key, (fan_in, fan_out), jnp.float32, -bound, bound)


def init_discriminator_params(key, num_inputs, num_outputs, hidden_dim):
    k1, k2, k3, k4 = jax.random.split(key, 4)
    return {
        "w1": _xavier_uniform(k1, num_inputs, hidden_dim),
        "b1": jnp.zeros((hidden_dim,), jnp.float32),
        "w2": _xavier_uniform(k2, hidden_dim, hidden_dim),
        "b2": jnp.zeros((hidden_dim,), jnp.float32),
        "w3": _xavier_uniform(k3, hidden_dim, hidden_dim),
        "b3": jnp.zeros((hidden_dim,), jnp.float32),
        "w4": _xavier_uniform(k4, hidden_dim, num_outputs),
        "b4": jnp.zeros((num_outputs,), jnp.float32),
    }


# ---------------------------------------------------------------------------
# Pure-JAX reference for verification (mirrors the kernel's cast points)
# ---------------------------------------------------------------------------
def discriminator_ref(state, params, disc_obs_index=None, compute_dtype=jnp.float32):
    if disc_obs_index is not None:
        state = state[:, jnp.asarray(disc_obs_index)]

    def lin(h, w, b, cast):
        if cast:
            h = h.astype(compute_dtype)
            w = w.astype(compute_dtype)
        return (jnp.dot(h, w, preferred_element_type=jnp.float32)
                + jnp.reshape(b, (1, -1)).astype(jnp.float32))

    h = jax.nn.relu(lin(state, params["w1"], params["b1"], False))
    h = jax.nn.relu(lin(h, params["w2"], params["b2"], True))
    h = jax.nn.relu(lin(h, params["w3"], params["b3"], True))
    h = lin(h, params["w4"], params["b4"], True)
    return 2.0 * jnp.tanh(h)


if __name__ == "__main__":
    key = jax.random.PRNGKey(0)
    k_params, k_state = jax.random.split(key)

    # Small shapes implied by the module's forward.
    batch = 16
    num_inputs_raw = 20
    hidden_dim = 32
    num_outputs = 4
    disc_obs_index = list(range(16))   # column subset, folded into W1 inside the kernel

    params = init_discriminator_params(
        k_params, len(disc_obs_index), num_outputs, hidden_dim)
    state = jax.random.normal(k_state, (batch, num_inputs_raw), jnp.float32)

    # 1) f32 path, single grid step (B <= 1024).
    prepped_f32 = prepare_discriminator_params(
        params, num_inputs_raw, disc_obs_index, compute_dtype=jnp.float32)
    out = jax.block_until_ready(discriminator_forward(state, prepped_f32))
    ref = discriminator_ref(state, params, disc_obs_index)
    assert out.shape == (batch, num_outputs)
    assert jnp.allclose(out, ref, atol=1e-4, rtol=1e-4), "f32 mismatch vs reference"

    # 2) bf16 weights/activations for the 128x128 layers (MXU-native on v5e/v6e).
    prepped_bf16 = prepare_discriminator_params(
        params, num_inputs_raw, disc_obs_index, compute_dtype=jnp.bfloat16)
    out_bf16 = jax.block_until_ready(discriminator_forward(state, prepped_bf16))
    ref_bf16 = discriminator_ref(state, params, disc_obs_index,
                                 compute_dtype=jnp.bfloat16)
    assert jnp.allclose(out_bf16, ref_bf16, atol=2e-3, rtol=2e-3), "bf16 mismatch"

    # 3) multi-step grid + non-multiple batch (exercises padding path / v7x 2-TC sharding).
    state2 = jax.random.normal(jax.random.PRNGKey(1), (20, num_inputs_raw), jnp.float32)
    out2 = jax.block_until_ready(
        discriminator_forward(state2, prepped_f32, batch_tile=8))
    ref2 = discriminator_ref(state2, params, disc_obs_index)
    assert out2.shape == (20, num_outputs)
    assert jnp.allclose(out2, ref2, atol=1e-4, rtol=1e-4), "padded-batch mismatch"

    print("KERNEL_OK")
</pallas_src>

<mosaic_0001>
module attributes {stable_mosaic.version = 11 : i64} {
  func.func @_discriminator_kernel(%arg0: i32, %arg1: memref<16x20xf32, #tpu.memory_space<vmem>>, %arg2: memref<20x128xf32, #tpu.memory_space<vmem>>, %arg3: memref<1x128xf32, #tpu.memory_space<vmem>>, %arg4: memref<128x128xf32, #tpu.memory_space<vmem>>, %arg5: memref<1x128xf32, #tpu.memory_space<vmem>>, %arg6: memref<128x128xf32, #tpu.memory_space<vmem>>, %arg7: memref<1x128xf32, #tpu.memory_space<vmem>>, %arg8: memref<128x128xf32, #tpu.memory_space<vmem>>, %arg9: memref<1x128xf32, #tpu.memory_space<vmem>>, %arg10: memref<16x128xf32, #tpu.memory_space<vmem>>) attributes {dimension_semantics = [#tpu.dimension_semantics<parallel>], iteration_bounds = array<i64: 1>, scalar_prefetch = 0 : i64, scratch_operands = 0 : i64, tpu.core_type = #tpu.core_type<tc>, window_params = [{transform_indices = @transform_0, window_bounds = array<i64: 16, 20>}, {pipeline_mode = #tpu.pipeline_mode<synchronous>, transform_indices = @transform_1, window_bounds = array<i64: 20, 128>}, {pipeline_mode = #tpu.pipeline_mode<synchronous>, transform_indices = @transform_2, window_bounds = array<i64: 1, 128>}, {pipeline_mode = #tpu.pipeline_mode<synchronous>, transform_indices = @transform_3, window_bounds = array<i64: 128, 128>}, {pipeline_mode = #tpu.pipeline_mode<synchronous>, transform_indices = @transform_4, window_bounds = array<i64: 1, 128>}, {pipeline_mode = #tpu.pipeline_mode<synchronous>, transform_indices = @transform_5, window_bounds = array<i64: 128, 128>}, {pipeline_mode = #tpu.pipeline_mode<synchronous>, transform_indices = @transform_6, window_bounds = array<i64: 1, 128>}, {pipeline_mode = #tpu.pipeline_mode<synchronous>, transform_indices = @transform_7, window_bounds = array<i64: 128, 128>}, {pipeline_mode = #tpu.pipeline_mode<synchronous>, transform_indices = @transform_8, window_bounds = array<i64: 1, 128>}, {transform_indices = @transform_9, window_bounds = array<i64: 16, 128>}]} {
    %c0 = arith.constant 0 : index
    %c0_0 = arith.constant 0 : index
    %0 = vector.load %arg1[%c0, %c0_0] : memref<16x20xf32, #tpu.memory_space<vmem>>, vector<16x20xf32>
    %c0_1 = arith.constant 0 : index
    %c0_2 = arith.constant 0 : index
    %1 = vector.load %arg2[%c0_1, %c0_2] : memref<20x128xf32, #tpu.memory_space<vmem>>, vector<20x128xf32>
    %cst = arith.constant dense<0.000000e+00> : vector<16x128xf32>
    %2 = tpu.matmul %0, %1, %cst {dimension_numbers = #tpu.dot_dimension_numbers<[1], [0], [0], [1], [0, 0, 1, 1], [], []>} : vector<16x20xf32>, vector<20x128xf32>, vector<16x128xf32> -> vector<16x128xf32>
    %c0_3 = arith.constant 0 : index
    %c0_4 = arith.constant 0 : index
    %3 = vector.load %arg3[%c0_3, %c0_4] : memref<1x128xf32, #tpu.memory_space<vmem>>, vector<1x128xf32>
    %4 = vector.broadcast %3 : vector<1x128xf32> to vector<16x128xf32>
    %5 = arith.addf %2, %4 : vector<16x128xf32>
    %cst_5 = arith.constant 0.000000e+00 : f32
    %6 = vector.broadcast %cst_5 : f32 to vector<16x128xf32>
    %7 = arith.maximumf %5, %6 : vector<16x128xf32>
    %c0_6 = arith.constant 0 : index
    %c0_7 = arith.constant 0 : index
    %8 = vector.load %arg4[%c0_6, %c0_7] : memref<128x128xf32, #tpu.memory_space<vmem>>, vector<128x128xf32>
    %cst_8 = arith.constant dense<0.000000e+00> : vector<16x128xf32>
    %9 = tpu.matmul %7, %8, %cst_8 {dimension_numbers = #tpu.dot_dimension_numbers<[1], [0], [0], [1], [0, 0, 1, 1], [], []>} : vector<16x128xf32>, vector<128x128xf32>, vector<16x128xf32> -> vector<16x128xf32>
    %c0_9 = arith.constant 0 : index
    %c0_10 = arith.constant 0 : index
    %10 = vector.load %arg5[%c0_9, %c0_10] : memref<1x128xf32, #tpu.memory_space<vmem>>, vector<1x128xf32>
    %11 = vector.broadcast %10 : vector<1x128xf32> to vector<16x128xf32>
    %12 = arith.addf %9, %11 : vector<16x128xf32>
    %cst_11 = arith.constant 0.000000e+00 : f32
    %13 = vector.broadcast %cst_11 : f32 to vector<16x128xf32>
    %14 = arith.maximumf %12, %13 : vector<16x128xf32>
    %c0_12 = arith.constant 0 : index
    %c0_13 = arith.constant 0 : index
    %15 = vector.load %arg6[%c0_12, %c0_13] : memref<128x128xf32, #tpu.memory_space<vmem>>, vector<128x128xf32>
    %cst_14 = arith.constant dense<0.000000e+00> : vector<16x128xf32>
    %16 = tpu.matmul %14, %15, %cst_14 {dimension_numbers = #tpu.dot_dimension_numbers<[1], [0], [0], [1], [0, 0, 1, 1], [], []>} : vector<16x128xf32>, vector<128x128xf32>, vector<16x128xf32> -> vector<16x128xf32>
    %c0_15 = arith.constant 0 : index
    %c0_16 = arith.constant 0 : index
    %17 = vector.load %arg7[%c0_15, %c0_16] : memref<1x128xf32, #tpu.memory_space<vmem>>, vector<1x128xf32>
    %18 = vector.broadcast %17 : vector<1x128xf32> to vector<16x128xf32>
    %19 = arith.addf %16, %18 : vector<16x128xf32>
    %cst_17 = arith.constant 0.000000e+00 : f32
    %20 = vector.broadcast %cst_17 : f32 to vector<16x128xf32>
    %21 = arith.maximumf %19, %20 : vector<16x128xf32>
    %c0_18 = arith.constant 0 : index
    %c0_19 = arith.constant 0 : index
    %22 = vector.load %arg8[%c0_18, %c0_19] : memref<128x128xf32, #tpu.memory_space<vmem>>, vector<128x128xf32>
    %cst_20 = arith.constant dense<0.000000e+00> : vector<16x128xf32>
    %23 = tpu.matmul %21, %22, %cst_20 {dimension_numbers = #tpu.dot_dimension_numbers<[1], [0], [0], [1], [0, 0, 1, 1], [], []>} : vector<16x128xf32>, vector<128x128xf32>, vector<16x128xf32> -> vector<16x128xf32>
    %c0_21 = arith.constant 0 : index
    %c0_22 = arith.constant 0 : index
    %24 = vector.load %arg9[%c0_21, %c0_22] : memref<1x128xf32, #tpu.memory_space<vmem>>, vector<1x128xf32>
    %25 = vector.broadcast %24 : vector<1x128xf32> to vector<16x128xf32>
    %26 = arith.addf %23, %25 : vector<16x128xf32>
    %27 = math.tanh %26 : vector<16x128xf32>
    %cst_23 = arith.constant 2.000000e+00 : f32
    %28 = vector.broadcast %cst_23 : f32 to vector<16x128xf32>
    %29 = arith.mulf %28, %27 : vector<16x128xf32>
    %c0_24 = arith.constant 0 : index
    %c0_25 = arith.constant 0 : index
    %30 = vector.load %arg10[%c0_24, %c0_25] : memref<16x128xf32, #tpu.memory_space<vmem>>, vector<16x128xf32>
    tpu.vector_store %arg10[%c0_24, %c0_25], %29 {strides = array<i32>} : memref<16x128xf32, #tpu.memory_space<vmem>>, vector<16x128xf32>,
    return
  }
  func.func @transform_0(%arg0: i32) -> (i32, i32) {
    %c0_i32 = arith.constant 0 : i32
    %c0_i32_0 = arith.constant 0 : i32
    return %arg0, %c0_i32 : i32, i32
  }
  func.func @transform_1(%arg0: i32) -> (i32, i32) {
    %c0_i32 = arith.constant 0 : i32
    %c0_i32_0 = arith.constant 0 : i32
    %c0_i32_1 = arith.constant 0 : i32
    return %c0_i32, %c0_i32_0 : i32, i32
  }
  func.func @transform_2(%arg0: i32) -> (i32, i32) {
    %c0_i32 = arith.constant 0 : i32
    %c0_i32_0 = arith.constant 0 : i32
    %c0_i32_1 = arith.constant 0 : i32
    return %c0_i32, %c0_i32_0 : i32, i32
  }
  func.func @transform_3(%arg0: i32) -> (i32, i32) {
    %c0_i32 = arith.constant 0 : i32
    %c0_i32_0 = arith.constant 0 : i32
    %c0_i32_1 = arith.constant 0 : i32
    return %c0_i32, %c0_i32_0 : i32, i32
  }
  func.func @transform_4(%arg0: i32) -> (i32, i32) {
    %c0_i32 = arith.constant 0 : i32
    %c0_i32_0 = arith.constant 0 : i32
    %c0_i32_1 = arith.constant 0 : i32
    return %c0_i32, %c0_i32_0 : i32, i32
  }
  func.func @transform_5(%arg0: i32) -> (i32, i32) {
    %c0_i32 = arith.constant 0 : i32
    %c0_i32_0 = arith.constant 0 : i32
    %c0_i32_1 = arith.constant 0 : i32
    return %c0_i32, %c0_i32_0 : i32, i32
  }
  func.func @transform_6(%arg0: i32) -> (i32, i32) {
    %c0_i32 = arith.constant 0 : i32
    %c0_i32_0 = arith.constant 0 : i32
    %c0_i32_1 = arith.constant 0 : i32
    return %c0_i32, %c0_i32_0 : i32, i32
  }
  func.func @transform_7(%arg0: i32) -> (i32, i32) {
    %c0_i32 = arith.constant 0 : i32
    %c0_i32_0 = arith.constant 0 : i32
    %c0_i32_1 = arith.constant 0 : i32
    return %c0_i32, %c0_i32_0 : i32, i32
  }
  func.func @transform_8(%arg0: i32) -> (i32, i32) {
    %c0_i32 = arith.constant 0 : i32
    %c0_i32_0 = arith.constant 0 : i32
    %c0_i32_1 = arith.constant 0 : i32
    return %c0_i32, %c0_i32_0 : i32, i32
  }
  func.func @transform_9(%arg0: i32) -> (i32, i32) {
    %c0_i32 = arith.constant 0 : i32
    %c0_i32_0 = arith.constant 0 : i32
    return %arg0, %c0_i32 : i32, i32
  }
}

</mosaic_0001>

<bundles_post_ra>
// kernel: tpu_custom_call.1
= control target key start
LH: loop header
LB: loop body
LE: loop exit
PB: predicated region body
PF: predicated region fallthrough
CT: control target
= control target key end

     0   :  { %14 = vsyncpa [#allocation3], 0  ;;  %s1134_s0 = inlined_call_operand.hbm [shape: f32[16,20], index: 0, kind: input, shape index: {}]   ;;  %s1135_s1 = inlined_call_operand.hbm [shape: f32[20,128], index: 1, kind: input, shape index: {}]   ;;  %s1136_s2 = inlined_call_operand.vmem [shape: f32[1,128], index: 2, kind: input, shape index: {}]   ;;  %s1137_s3 = inlined_call_operand.hbm [shape: f32[128,128], index: 3, kind: input, shape index: {}]   ;;  %s1138_s4 = inlined_call_operand.vmem [shape: f32[1,128], index: 4, kind: input, shape index: {}]   ;;  %s1139_s5 = inlined_call_operand.hbm [shape: f32[128,128], index: 5, kind: input, shape index: {}]   ;;  %s1140_s6 = inlined_call_operand.vmem [shape: f32[1,128], index: 6, kind: input, shape index: {}]   ;;  %s1141_s7 = inlined_call_operand.hbm [shape: f32[128,128], index: 7, kind: input, shape index: {}]   ;;  %s1142_s8 = inlined_call_operand.vmem [shape: f32[1,128], index: 8, kind: input, shape index: {}]   ;;  %s1143_s9 = inlined_call_operand.hbm [shape: f32[16,128], index: 9, kind: output, shape index: {}]  }
   0x1   :  { %15 = vsyncpa [#allocation6], 0 }
   0x2   :  { %16 = vsyncpa [#allocation9], 0 }
   0x3   :  { %17 = vsyncpa [#allocation4], 0  ;;  %s956_s30 = smov [#allocation5]   ;;  %s957_s11 = smov [#allocation8]  }
   0x4   :  { %s35_s10 = sshll.u32 %s956_s30, 4  ;;  %s63_s12 = sshll.u32 %s957_s11, 4  ;;  %s36_s10 = int_to_ptr.vmem [resolvable:$true] %s35_s10  ;;  %s1014_s12 = int_to_ptr.vmem [resolvable:$true] %s63_s12 }
   0x5   :  { %s816_s15 = scalar_lea.hbm %s1135_s1, 384 }
   0x6   :  { %p817_p0 = scmp.ne.s32.totalorder %s1135_s1, %s816_s15  ;;  %p820_p1 = scmp.lt.u32.totalorder %s816_s15, %s1135_s1 }
   0x8   :  { %p822_p2 = pnand %p820_p1, %p817_p0 }
   0xa   :  { %825 = shalt.err (!%p822_p2)
}
   0xb   :  { %s826_s20 = scalar_lea.vmem %s36_s10, 384  ;;  %p831_p4 = scmp.lt.s32.totalorder %s36_s10, %s36_s10 }
   0xc   :  { %p827_p3 = scmp.ne.s32.totalorder %s36_s10, %s826_s20  ;;  %p832_p5 = scmp.lt.s32.totalorder %s826_s20, %s826_s20 }
   0xe   :  { %p833_p6 = por %p832_p5, %p831_p4 }
  0x10   :  { %p834_p7 = pnand %p833_p6, %p827_p3 }
  0x12   :  { %837 = shalt.err (!%p834_p7)
}
  0x13   :  { %s958_s21 = smov 128   ;;  %s959_s22 = smov 8  }
  0x14   :  { %41 = dma.hbm_to_vmem [thread:$0]  %s1135_s1, 384, %s36_s10, [#allocation6], %s958_s21, %s958_s21, %s959_s22  }
  0x15   :  { %s838_s27 = scalar_lea.hbm %s1139_s5, 2048 }
  0x16   :  { %p839_p8 = scmp.ne.s32.totalorder %s1139_s5, %s838_s27  ;;  %p842_p9 = scmp.lt.u32.totalorder %s838_s27, %s1139_s5 }
  0x18   :  { %p844_p10 = pnand %p842_p9, %p839_p8 }
  0x1a   :  { %847 = shalt.err (!%p844_p10)
}
  0x1b   :  { %s848_s13 = scalar_lea.vmem %s1014_s12, 2048  ;;  %p853_p12 = scmp.lt.s32.totalorder %s1014_s12, %s1014_s12 }
  0x1c   :  { %p849_p11 = scmp.ne.s32.totalorder %s1014_s12, %s848_s13  ;;  %p854_p13 = scmp.lt.s32.totalorder %s848_s13, %s848_s13 }
  0x1e   :  { %p855_p0 = por %p854_p13, %p853_p12 }
  0x20   :  { %p856_p1 = pnand %p855_p0, %p849_p11 }
  0x22   :  { %859 = shalt.err (!%p856_p1)
}
  0x23   :  { %69 = dma.hbm_to_vmem [thread:$0]  %s1139_s5, 2048, %s1014_s12, [#allocation9], %s958_s21, %s958_s21, %s959_s22  }
  0x24   :  { %s960_s14 = smov [#allocation2]   ;;  %s961_s16 = smov [#allocation7]  }
  0x25   :  { %s23_s15 = sshll.u32 %s960_s14, 4  ;;  %s49_s17 = sshll.u32 %s961_s16, 4  ;;  %s24_s15 = int_to_ptr.vmem [resolvable:$true] %s23_s15  ;;  %s1051_s17 = int_to_ptr.vmem [resolvable:$true] %s49_s17 }
  0x26   :  { %s860_s20 = scalar_lea.hbm %s1134_s0, 256 }
  0x27   :  { %p861_p2 = scmp.ne.s32.totalorder %s1134_s0, %s860_s20  ;;  %p864_p3 = scmp.lt.u32.totalorder %s860_s20, %s1134_s0 }
  0x29   :  { %p866_p4 = pnand %p864_p3, %p861_p2 }
  0x2b   :  { %869 = shalt.err (!%p866_p4)
}
  0x2c   :  { %s870_s5 = scalar_lea.vmem %s24_s15, 256  ;;  %p875_p6 = scmp.lt.s32.totalorder %s24_s15, %s24_s15 }
  0x2d   :  { %p871_p5 = scmp.ne.s32.totalorder %s24_s15, %s870_s5  ;;  %p876_p7 = scmp.lt.s32.totalorder %s870_s5, %s870_s5 }
  0x2f   :  { %p877_p8 = por %p876_p7, %p875_p6 }
  0x31   :  { %p878_p9 = pnand %p877_p8, %p871_p5 }
  0x33   :  { %881 = shalt.err (!%p878_p9)
}
  0x34   :  { %29 = dma.hbm_to_vmem [thread:$0]  %s1134_s0, 256, %s24_s15, [#allocation3], %s958_s21, %s958_s21, %s959_s22  }
  0x35   :  { %s882_s30 = scalar_lea.hbm %s1137_s3, 2048 }
  0x36   :  { %p883_p10 = scmp.ne.s32.totalorder %s1137_s3, %s882_s30  ;;  %p886_p11 = scmp.lt.u32.totalorder %s882_s30, %s1137_s3 }
  0x38   :  { %p888_p12 = pnand %p886_p11, %p883_p10 }
  0x3a   :  { %891 = shalt.err (!%p888_p12)
}
  0x3b   :  { %s892_s14 = scalar_lea.vmem %s1051_s17, 2048  ;;  %p897_p0 = scmp.lt.s32.totalorder %s1051_s17, %s1051_s17 }
  0x3c   :  { %p893_p13 = scmp.ne.s32.totalorder %s1051_s17, %s892_s14  ;;  %p898_p1 = scmp.lt.s32.totalorder %s892_s14, %s892_s14 }
  0x3e   :  { %p899_p2 = por %p898_p1, %p897_p0 }
  0x40   :  { %p900_p3 = pnand %p899_p2, %p893_p13 }
  0x42   :  { %903 = shalt.err (!%p900_p3)
}
  0x43   :  { %55 = dma.hbm_to_vmem [thread:$0]  %s1137_s3, 2048, %s1051_s17, [#allocation6], %s958_s21, %s958_s21, %s959_s22  }
  0x44   :  { %s962_s16 = smov [#allocation10]   ;;  %s904_s23 = scalar_lea.hbm %s1141_s7, 2048 }
  0x45   :  { %s77_s18 = sshll.u32 %s962_s16, 4  ;;  %p905_p4 = scmp.ne.s32.totalorder %s1141_s7, %s904_s23  ;;  %s78_s18 = int_to_ptr.vmem [resolvable:$true] %s77_s18 }
  0x46   :  { %p908_p5 = scmp.lt.u32.totalorder %s904_s23, %s1141_s7 }
  0x48   :  { %p910_p6 = pnand %p908_p5, %p905_p4 }
  0x4a   :  { %913 = shalt.err (!%p910_p6)
}
  0x4b   :  { %s914_s12 = scalar_lea.vmem %s78_s18, 2048  ;;  %p919_p8 = scmp.lt.s32.totalorder %s78_s18, %s78_s18 }
  0x4c   :  { %p915_p7 = scmp.ne.s32.totalorder %s78_s18, %s914_s12  ;;  %p920_p9 = scmp.lt.s32.totalorder %s914_s12, %s914_s12 }
  0x4e   :  { %p921_p10 = por %p920_p9, %p919_p8 }
  0x50   :  { %p922_p11 = pnand %p921_p10, %p915_p7 }
  0x52   :  { %925 = shalt.err (!%p922_p11)
}
  0x53   :  { %83 = dma.hbm_to_vmem [thread:$0]  %s1141_s7, 2048, %s78_s18, [#allocation9], %s958_s21, %s958_s21, %s959_s22  }
  0x54   :  { %948 = dma.done.wait [#allocation3], 256  }
  0x55   :  { %949 = vsyncadd [#allocation3], 4294967040 }
  0x56   :  { %950 = dma.done.wait [#allocation6], 2432  }
  0x57   :  { %951 = vsyncadd [#allocation6], 4294964864 }
  0x58   :  { %952 = dma.done.wait [#allocation9], 4096  }
  0x59   :  { %953 = vsyncadd [#allocation9], 4294963200  ;;  %vm113_vm0 = vcmask 162816   ;;  %v103_v0 = vld [vmem:[#allocation5] sm:$0xff]  ;;  %v104_v1 = vld [vmem:[#allocation5 + $0x8] sm:$0xff]  ;;  %vm120_vm1 = vcmask 1043456  }
  0x5a   :  { %v704_v2 = vpack.c.bf16 %v104_v1, %v103_v0  ;;  %v105_v3 = vld [vmem:[#allocation5 + $0x10] sm:$0xf]  ;;  %v201_v5 = vld [vmem:[#allocation7] sm:$0xff]  ;;  %v202_v6 = vld [vmem:[#allocation7 + $0x8] sm:$0xff]  ;;  %s963_s13 = smov [#allocation11]  }
  0x5b   :  { %v101_v4 = vld [vmem:[#allocation2] sm:$0xff]  ;;  %v203_v7 = vld [vmem:[#allocation7 + $0x10] sm:$0xff]  ;;  %v708_v9 = vpack.c.bf16 %v202_v6, %v201_v5  ;;  %v205_v11 = vld [vmem:[#allocation7 + $0x20] sm:$0xff] }
  0x5c   :  { %596 = vmatprep.mubr.msk.f32.mxu0 %vm113_vm0, %v101_v4  ;;  %v204_v8 = vld [vmem:[#allocation7 + $0x18] sm:$0xff]  ;;  %705 = vmatprep.subr.bf16.mxu0 %v704_v2  ;;  %v206_v12 = vld [vmem:[#allocation7 + $0x28] sm:$0xff]  ;;  %v102_v13 = vld [vmem:[#allocation2 + $0x8] sm:$0xff] }
  0x5d   :  { %v712_v10 = vpack.c.bf16 %v204_v8, %v203_v7  ;;  %707 = vmatpush3.bf16.msra.mxu0 %v704_v2  ;;  %709 = vmatprep.subr.bf16.mxu1 %v708_v9  ;;  %v716_v14 = vpack.c.bf16 %v206_v12, %v205_v11  ;;  %v207_v15 = vld [vmem:[#allocation7 + $0x30] sm:$0xff]  ;;  %v208_v16 = vld [vmem:[#allocation7 + $0x38] sm:$0xff]  ;;  %v209_v18 = vld [vmem:[#allocation7 + $0x40] sm:$0xff] }
  0x5e   :  { %594 = vmatprep.subr.msk.mxu0 %vm120_vm1, %v105_v3  ;;  %711 = vmatpush3.bf16.msra.mxu1 %v708_v9  ;;  %v720_v17 = vpack.c.bf16 %v208_v16, %v207_v15  ;;  %v210_v19 = vld [vmem:[#allocation7 + $0x48] sm:$0xff]  ;;  %v211_v21 = vld [vmem:[#allocation7 + $0x50] sm:$0xff]  ;;  %v212_v22 = vld [vmem:[#allocation7 + $0x58] sm:$0xff] }
  0x5f   :  { %713 = vmatprep.subr.bf16.mxu1 %v712_v10  ;;  %v724_v20 = vpack.c.bf16 %v210_v19, %v209_v18  ;;  %v728_v23 = vpack.c.bf16 %v212_v22, %v211_v21  ;;  %v213_v24 = vld [vmem:[#allocation7 + $0x60] sm:$0xff]  ;;  %v214_v25 = vld [vmem:[#allocation7 + $0x68] sm:$0xff]  ;;  %v215_v27 = vld [vmem:[#allocation7 + $0x70] sm:$0xff] }
  0x60   :  { %v732_v26 = vpack.c.bf16 %v214_v25, %v213_v24  ;;  %v216_v28 = vld [vmem:[#allocation7 + $0x78] sm:$0xff]  ;;  %v301_v30 = vld [vmem:[#allocation8] sm:$0xff]  ;;  %v302_v31 = vld [vmem:[#allocation8 + $0x8] sm:$0xff] }
  0x61   :  { %595 = vmatpush3.msk.msra.mxu0 %vm120_vm1, %v105_v3  ;;  %v736_v29 = vpack.c.bf16 %v216_v28, %v215_v27  ;;  %v303_v32 = vld [vmem:[#allocation8 + $0x10] sm:$0xff]  ;;  %v740_v33 = vpack.c.bf16 %v302_v31, %v301_v30  ;;  %v304_v34 = vld [vmem:[#allocation8 + $0x18] sm:$0xff]  ;;  %v305_v36 = vld [vmem:[#allocation8 + $0x20] sm:$0xff] }
  0x62   :  { %597 = vmatmul.mubr.msk.f32.vlgmr.msra.gmra.mrb[0].mxu0 %vm113_vm0, %v102_v13  ;;  %715 = vmatpush3.bf16.msra.mxu1 %v712_v10  ;;  %v744_v35 = vpack.c.bf16 %v304_v34, %v303_v32  ;;  %v306_v37 = vld [vmem:[#allocation8 + $0x28] sm:$0xff]  ;;  %v307_v39 = vld [vmem:[#allocation8 + $0x30] sm:$0xff]  ;;  %v308_v40 = vld [vmem:[#allocation8 + $0x38] sm:$0xff] }
  0x63   :  { %717 = vmatprep.subr.bf16.mxu1 %v716_v14  ;;  %741 = vmatprep.subr.bf16.mxu0 %v740_v33  ;;  %v748_v38 = vpack.c.bf16 %v306_v37, %v305_v36  ;;  %v752_v41 = vpack.c.bf16 %v308_v40, %v307_v39  ;;  %v309_v42 = vld [vmem:[#allocation8 + $0x40] sm:$0xff]  ;;  %v310_v43 = vld [vmem:[#allocation8 + $0x48] sm:$0xff]  ;;  %v311_v45 = vld [vmem:[#allocation8 + $0x50] sm:$0xff] }
  0x64   :  { %743 = vmatpush3.bf16.msra.mxu0 %v740_v33  ;;  %v756_v44 = vpack.c.bf16 %v310_v43, %v309_v42  ;;  %v312_v46 = vld [vmem:[#allocation8 + $0x58] sm:$0xff]  ;;  %v313_v48 = vld [vmem:[#allocation8 + $0x60] sm:$0xff]  ;;  %v314_v49 = vld [vmem:[#allocation8 + $0x68] sm:$0xff] }
  0x65   :  { %745 = vmatprep.subr.bf16.mxu0 %v744_v35  ;;  %v760_v47 = vpack.c.bf16 %v312_v46, %v311_v45  ;;  %v764_v50 = vpack.c.bf16 %v314_v49, %v313_v48  ;;  %v524_v51 = vld [vmem:[%s1136_s2] ss:$0 sm:$0xff]  ;;  %v315_v58 = vld [vmem:[#allocation8 + $0x70] sm:$0xff]  ;;  %v401_v61 = vld [vmem:[#allocation10] sm:$0xff] }
  0x66   :  { %719 = vmatpush3.bf16.msra.mxu1 %v716_v14  ;;  %v316_v59 = vld [vmem:[#allocation8 + $0x78] sm:$0xff]  ;;  %v402_v62 = vld [vmem:[#allocation10 + $0x8] sm:$0xff]  ;;  %v403_v63 = vld [vmem:[#allocation10 + $0x10] sm:$0xff] }
  0x67   :  { %721 = vmatprep.subr.bf16.mxu1 %v720_v17  ;;  %v768_v60 = vpack.c.bf16 %v316_v59, %v315_v58  ;;  %v772_v0 = vpack.c.bf16 %v402_v62, %v401_v61  ;;  %v404_v1 = vld [vmem:[#allocation10 + $0x18] sm:$0xff]  ;;  %v405_v3 = vld [vmem:[#allocation10 + $0x20] sm:$0xff]  ;;  %v406_v4 = vld [vmem:[#allocation10 + $0x28] sm:$0xff] }
  0x68   :  { %747 = vmatpush3.bf16.msra.mxu0 %v744_v35  ;;  %v776_v2 = vpack.c.bf16 %v404_v1, %v403_v63  ;;  %v780_v5 = vpack.c.bf16 %v406_v4, %v405_v3  ;;  %v407_v6 = vld [vmem:[#allocation10 + $0x30] sm:$0xff]  ;;  %v408_v7 = vld [vmem:[#allocation10 + $0x38] sm:$0xff]  ;;  %v409_v9 = vld [vmem:[#allocation10 + $0x40] sm:$0xff] }
  0x69   :  { %749 = vmatprep.subr.bf16.mxu0 %v748_v38  ;;  %v784_v8 = vpack.c.bf16 %v408_v7, %v407_v6  ;;  %v410_v10 = vld [vmem:[#allocation10 + $0x48] sm:$0xff]  ;;  %v411_v12 = vld [vmem:[#allocation10 + $0x50] sm:$0xff]  ;;  %v412_v13 = vld [vmem:[#allocation10 + $0x58] sm:$0xff] }
  0x6a   :  { %723 = vmatpush3.bf16.msra.mxu1 %v720_v17  ;;  %v788_v11 = vpack.c.bf16 %v410_v10, %v409_v9  ;;  %v792_v14 = vpack.c.bf16 %v412_v13, %v411_v12  ;;  %v413_v15 = vld [vmem:[#allocation10 + $0x60] sm:$0xff]  ;;  %v414_v16 = vld [vmem:[#allocation10 + $0x68] sm:$0xff]  ;;  %v528_v18 = vld [vmem:[%s1138_s4] ss:$0 sm:$0xff] }
  0x6b   :  { %725 = vmatprep.subr.bf16.mxu1 %v724_v20  ;;  %v796_v17 = vpack.c.bf16 %v414_v16, %v413_v15  ;;  %v415_v25 = vld [vmem:[#allocation10 + $0x70] sm:$0xff]  ;;  %v529_v28 = vld [vmem:[%s1140_s6] ss:$0 sm:$0xff]  ;;  %s510_s6 = sshll.u32 %s963_s13, 4  ;;  %s511_s6 = int_to_ptr.vmem [resolvable:$true] %s510_s6 }
  0x6c   :  { %751 = vmatpush3.bf16.msra.mxu0 %v748_v38  ;;  %v530_v35 = vld [vmem:[%s1142_s8] ss:$0 sm:$0xff]  ;;  %s926_s1 = scalar_lea.vmem %s511_s6, 256  ;;  %p931_p13 = scmp.lt.s32.totalorder %s511_s6, %s511_s6 }
  0x6d   :  { %753 = vmatprep.subr.bf16.mxu0 %v752_v41  ;;  %p927_p12 = scmp.ne.s32.totalorder %s511_s6, %s926_s1  ;;  %p932_p0 = scmp.lt.s32.totalorder %s926_s1, %s926_s1 }
  0x6e   :  { %727 = vmatpush3.bf16.msra.mxu1 %v724_v20 }
  0x6f   :  { %729 = vmatprep.subr.bf16.mxu1 %v728_v23  ;;  %p933_p1 = por %p932_p0, %p931_p13 }
  0x70   :  { %755 = vmatpush3.bf16.msra.mxu0 %v752_v41 }
  0x71   :  { %757 = vmatprep.subr.bf16.mxu0 %v756_v44  ;;  %p934_p2 = pnand %p933_p1, %p927_p12 }
  0x72   :  { %731 = vmatpush3.bf16.msra.mxu1 %v728_v23 }
  0x73   :  { %733 = vmatprep.subr.bf16.mxu1 %v732_v26 }
  0x74   :  { %759 = vmatpush3.bf16.msra.mxu0 %v756_v44 }
  0x75   :  { %761 = vmatprep.subr.bf16.mxu0 %v760_v47 }
  0x76   :  { %735 = vmatpush3.bf16.msra.mxu1 %v732_v26  ;;  %v416_v26 = vld [vmem:[#allocation10 + $0x78] sm:$0xff] }
  0x77   :  { %737 = vmatprep.subr.bf16.mxu1 %v736_v29  ;;  %v800_v27 = vpack.c.bf16 %v416_v26, %v415_v25 }
  0x78   :  { %763 = vmatpush3.bf16.msra.mxu0 %v760_v47 }
  0x79   :  { %765 = vmatprep.subr.bf16.mxu0 %v764_v50 }
  0x7a   :  { %739 = vmatpush3.bf16.msra.mxu1 %v736_v29 }
  0x7b   :  { %773 = vmatprep.subr.bf16.mxu1 %v772_v0 }
  0x7c   :  { %767 = vmatpush3.bf16.msra.mxu0 %v764_v50 }
  0x7d   :  { %769 = vmatprep.subr.bf16.mxu0 %v768_v60 }
  0x80   :  { %771 = vmatpush3.bf16.msra.mxu0 %v768_v60 }
 0x135   :  { %v598_v52 = vpop.f32.mrb[0].mxu0 }
 0x136   :  { %v196_v53 = vadd.f32 %v598_v52, %v524_v51  ;;  %v190_v54 = vpop.f32.mrb[1].mxu0 }
 0x137   :  { %v191_v55 = vadd.f32 %v524_v51, %v190_v54 }
 0x138   :  { %v200_v57 = vmax.f32 %v196_v53, 0.0 }
 0x139   :  { %v199_v56 = vmax.f32 %v191_v55, 0.0 }
 0x13b   :  { %631 = vmatprep.mubr.f32.mxu1 %v199_v56 }
 0x13c   :  { %632 = vmatmul.mubr.f32.vlgmr.msra.gmra.mrb[0].mxu1 %v200_v57 }
 0x13d   :  { %775 = vmatpush3.bf16.msra.mxu1 %v772_v0 }
 0x13e   :  { %777 = vmatprep.subr.bf16.mxu1 %v776_v2 }
 0x141   :  { %779 = vmatpush3.bf16.msra.mxu1 %v776_v2 }
 0x142   :  { %781 = vmatprep.subr.bf16.mxu1 %v780_v5 }
 0x145   :  { %783 = vmatpush3.bf16.msra.mxu1 %v780_v5 }
 0x146   :  { %785 = vmatprep.subr.bf16.mxu1 %v784_v8 }
 0x149   :  { %787 = vmatpush3.bf16.msra.mxu1 %v784_v8 }
 0x14a   :  { %789 = vmatprep.subr.bf16.mxu1 %v788_v11 }
 0x14d   :  { %791 = vmatpush3.bf16.msra.mxu1 %v788_v11 }
 0x14e   :  { %793 = vmatprep.subr.bf16.mxu1 %v792_v14 }
 0x151   :  { %795 = vmatpush3.bf16.msra.mxu1 %v792_v14 }
 0x152   :  { %797 = vmatprep.subr.bf16.mxu1 %v796_v17 }
 0x155   :  { %799 = vmatpush3.bf16.msra.mxu1 %v796_v17 }
 0x156   :  { %801 = vmatprep.subr.bf16.mxu1 %v800_v27 }
 0x159   :  { %803 = vmatpush3.bf16.msra.mxu1 %v800_v27 }
 0x20f   :  { %v633_v19 = vpop.f32.mrb[0].mxu1 }
 0x210   :  { %v296_v20 = vadd.f32 %v633_v19, %v528_v18  ;;  %v290_v21 = vpop.f32.mrb[1].mxu1 }
 0x211   :  { %v291_v22 = vadd.f32 %v528_v18, %v290_v21 }
 0x212   :  { %v300_v24 = vmax.f32 %v296_v20, 0.0 }
 0x213   :  { %v299_v23 = vmax.f32 %v291_v22, 0.0 }
 0x215   :  { %666 = vmatprep.mubr.f32.mxu0 %v299_v23 }
 0x216   :  { %667 = vmatmul.mubr.f32.vlgmr.msra.gmra.mrb[2].mxu0 %v300_v24 }
 0x2e9   :  { %v668_v29 = vpop.f32.mrb[2].mxu0 }
 0x2ea   :  { %v396_v30 = vadd.f32 %v668_v29, %v529_v28  ;;  %v390_v31 = vpop.f32.mrb[3].mxu0 }
 0x2eb   :  { %v391_v32 = vadd.f32 %v529_v28, %v390_v31 }
 0x2ec   :  { %v400_v34 = vmax.f32 %v396_v30, 0.0 }
 0x2ed   :  { %v399_v33 = vmax.f32 %v391_v32, 0.0 }
 0x2ef   :  { %701 = vmatprep.mubr.f32.mxu1 %v399_v33 }
 0x2f0   :  { %702 = vmatmul.mubr.f32.vlgmr.msra.gmra.mrb[2].mxu1 %v400_v34 }
 0x3c3   :  { %v703_v36 = vpop.f32.mrb[2].mxu1 }
 0x3c4   :  { %v496_v37 = vadd.f32 %v703_v36, %v530_v35  ;;  %v490_v38 = vpop.f32.mrb[3].mxu1 }
 0x3c5   :  { %v491_v39 = vadd.f32 %v530_v35, %v490_v38 }
 0x3c6   :  { %812 = vtanh.f32 %v496_v37 }
 0x3c7   :  { %814 = vtanh.f32 %v491_v39 }
 0x3d0   :  { %v813_v40 = vpop.eup %812 }
 0x3d1   :  { %v815_v41 = vpop.eup %814  ;;  %v502_v42 = vmul.f32 2.0, %v813_v40 }
 0x3d2   :  { %v501_v43 = vmul.f32 2.0, %v815_v41 }
 0x3d3   :  { %504 = vst [vmem:[#allocation11 + $0x8] sm:$0xff] %v502_v42 }
 0x3d4   :  { %503 = vst [vmem:[#allocation11] sm:$0xff] %v501_v43 }
 0x3d5   :  { %937 = shalt.err (!%p934_p2)
}
 0x3d6   :  { %s938_s14 = scalar_lea.hbm %s1143_s9, 256 }
 0x3d7   :  { %p939_p3 = scmp.ne.s32.totalorder %s1143_s9, %s938_s14  ;;  %p942_p4 = scmp.lt.u32.totalorder %s938_s14, %s1143_s9 }
 0x3d9   :  { %p944_p5 = pnand %p942_p4, %p939_p3 }
 0x3db   :  { %947 = shalt.err (!%p944_p5)
}
 0x3dc   :  { %516 = dma.vmem_to_hbm [thread:$0]  %s511_s6, 256, %s1143_s9, [#allocation4], %s958_s21, %s958_s21, %s959_s22  }
 0x3dd   :  { %954 = dma.done.wait [#allocation4], 256  }
 0x3de   :  { %955 = vsyncadd [#allocation4], 4294967040 }
 0x3df   :  { %520 = vsyncpa [#allocation3], 1 }
 0x3e0   :  { %521 = vsyncpa [#allocation6], 1 }
 0x3e1   :  { %522 = vsyncpa [#allocation9], 1 }
 0x3e2   :  { %523 = vsyncpa [#allocation4], 1 }

</bundles_post_ra>
